<compile_context>
chip_gen: v6e
topology: v6e:2x2x1
jax: 0.10.0
libtpu: 0.0.40
codegen_flags: <defaults>
</compile_context>

<pallas_src>
import functools

import jax
import jax.numpy as jnp
from jax.experimental import pallas as pl
from jax.experimental.pallas import tpu as pltpu


def _mlp_kernel(x_ref, w1_ref, g_ref, beta_ref, w2_ref, b2_ref, o_ref,
                *, B, M, eps=1e-5):
    BM = B * M
    H = w1_ref.shape[1]
    compute_dtype = w1_ref.dtype

    # ---- Linear 1 (bias omitted: exactly cancelled by training-mode BN mean) ----
    # Cast the activation to the MXU compute dtype in-kernel.
    x = x_ref[...].astype(compute_dtype)                                  # (BM, DIM)
    h = jnp.dot(x, w1_ref[...], preferred_element_type=jnp.float32)       # (BM, H) f32

    # ---- BatchNorm1d: per-m batch stats over the B axis, one fused pass ----
    # Row r of the flattened activations is (b, m) = (r // M, r % M).
    # Group matrices are generated in-kernel from iotas (no O(BM^2) matrix,
    # no per-call wrapper prep):
    #   S[g, r] = 1/B  if r % M == g    (M,  BM)  -> per-group means
    #   G[r, g] = 1    if r % M == g    (BM, M)   -> broadcast back to rows
    g_row = jax.lax.broadcasted_iota(jnp.int32, (M, BM), 0)
    r_col = jax.lax.broadcasted_iota(jnp.int32, (M, BM), 1)
    S = jnp.where(r_col % M == g_row, 1.0 / B, 0.0).astype(jnp.float32)
    r_row = jax.lax.broadcasted_iota(jnp.int32, (BM, M), 0)
    g_col = jax.lax.broadcasted_iota(jnp.int32, (BM, M), 1)
    G = jnp.where(r_row % M == g_col, 1.0, 0.0).astype(jnp.float32)

    # Single lane-dense (BM, 2H) stats pass instead of two half-width matmuls.
    # Stats path stays in f32 regardless of compute_dtype.
    cat = jnp.concatenate([h, h * h], axis=-1)                             # (BM, 2H) f32
    stats = jnp.dot(G,
                    jnp.dot(S, cat, preferred_element_type=jnp.float32),
                    preferred_element_type=jnp.float32)                    # (BM, 2H) f32
    mu = stats[:, :H]
    var = jnp.maximum(stats[:, H:] - mu * mu, 0.0)                         # biased var

    # Normalize + affine + ReLU (f32 VPU path; v5e has no bf16 VPU/EUP).
    h = (h - mu) * jax.lax.rsqrt(var + eps)
    h = jnp.maximum(h * g_ref[...] + beta_ref[...], 0.0)

    # ---- Linear 2 ----
    y = jnp.dot(h.astype(compute_dtype), w2_ref[...],
                preferred_element_type=jnp.float32) + b2_ref[...]          # (BM, P) f32
    o_ref[...] = y.astype(o_ref.dtype)


def prepare_mlp_params(w1, b1, gamma, beta, w2, b2, *, compute_dtype=jnp.bfloat16):
    """One-time parameter prep (hoisted out of the per-call hot path).

    PyTorch-shaped params: w1 (H, DIM), b1 (H,), gamma/beta (H,), w2 (P, H),
    b2 (P,).  b1 is dropped: training-mode BN mean subtraction cancels it.
    """
    del b1
    H = w1.shape[0]
    P = w2.shape[0]
    return dict(
        w1_t=jnp.transpose(w1).astype(compute_dtype),    # (DIM, H)
        w2_t=jnp.transpose(w2).astype(compute_dtype),    # (H, P)
        gamma=gamma.reshape(1, H).astype(jnp.float32),
        beta=beta.reshape(1, H).astype(jnp.float32),
        b2=b2.reshape(1, P).astype(jnp.float32),
    )


def mlp_forward(x_bmc, params):
    """x_bmc: (B, M, DIM) -> (B, M, P). Matches the PyTorch module (training BN)."""
    B, M, DIM = x_bmc.shape
    P = params["w2_t"].shape[1]
    BM = B * M

    # Free contiguous view (row r = b*M + m); no transposes, no dtype pass.
    x2 = x_bmc.reshape(BM, DIM)

    vmem = pl.BlockSpec(memory_space=pltpu.MemorySpace.VMEM)
    kernel = functools.partial(_mlp_kernel, B=B, M=M)
    out2 = pl.pallas_call(
        kernel,
        out_shape=jax.ShapeDtypeStruct((BM, P), x_bmc.dtype),
        in_specs=[vmem] * 6,
        out_specs=vmem,
        compiler_params=pltpu.CompilerParams(vmem_limit_bytes=48 * 1024 * 1024),
    )(x2, params["w1_t"], params["gamma"], params["beta"],
      params["w2_t"], params["b2"])

    return out2.reshape(B, M, P)                           # free contiguous view


def mlp_reference(x_bmc, w1, b1, gamma, beta, w2, b2):
    """Pure-JAX reference matching PyTorch forward semantics (b1 included)."""
    eps = 1e-5
    x_mbc = jnp.transpose(x_bmc, (1, 0, 2)).astype(jnp.float32)

    def per_slice(t):  # t: (B, DIM)
        h = t @ w1.T + b1
        mean = jnp.mean(h, axis=0, keepdims=True)
        var = jnp.mean((h - mean) ** 2, axis=0, keepdims=True)
        h = (h - mean) / jnp.sqrt(var + eps)
        h = h * gamma + beta
        h = jnp.maximum(h, 0.0)
        return h @ w2.T + b2

    out = jax.vmap(per_slice)(x_mbc)                       # (M, B, P)
    return jnp.transpose(out, (1, 0, 2))


if __name__ == "__main__":
    # Small, module-consistent shapes: (b, m, c) input, dim->hidden->projection.
    B, M, DIM = 8, 4, 32
    H, P = 64, 16

    key = jax.random.PRNGKey(0)
    kx, k1, k2, k3, k4, k5, k6 = jax.random.split(key, 7)

    x = jax.random.normal(kx, (B, M, DIM), dtype=jnp.float32)
    w1 = jax.random.normal(k1, (H, DIM), dtype=jnp.float32) * 0.05
    b1 = jax.random.normal(k2, (H,), dtype=jnp.float32) * 0.05
    gamma = 1.0 + 0.1 * jax.random.normal(k3, (H,), dtype=jnp.float32)
    beta = 0.1 * jax.random.normal(k4, (H,), dtype=jnp.float32)
    w2 = jax.random.normal(k5, (P, H), dtype=jnp.float32) * 0.05
    b2 = jax.random.normal(k6, (P,), dtype=jnp.float32) * 0.05

    ref = mlp_reference(x, w1, b1, gamma, beta, w2, b2)

    # Production default: bf16 MXU operands, f32 stats (loose tolerance check).
    params_bf16 = prepare_mlp_params(w1, b1, gamma, beta, w2, b2,
                                     compute_dtype=jnp.bfloat16)
    fwd = jax.jit(mlp_forward)
    out = jax.block_until_ready(fwd(x, params_bf16))
    assert out.shape == (B, M, P), out.shape
    assert jnp.allclose(out, ref, atol=3e-2, rtol=3e-2), "bf16 path mismatch"

    # Tight numerical check with f32 MXU operands (same kernel).
    params_f32 = prepare_mlp_params(w1, b1, gamma, beta, w2, b2,
                                    compute_dtype=jnp.float32)
    out32 = jax.block_until_ready(mlp_forward(x, params_f32))
    assert jnp.allclose(out32, ref, atol=1e-4, rtol=1e-4), "f32 path mismatch"

    print("KERNEL_OK")
</pallas_src>

<mosaic_0001>
module attributes {stable_mosaic.version = 11 : i64} {
  func.func @_mlp_kernel(%arg0: memref<32x32xf32, #tpu.memory_space<vmem>>, %arg1: memref<32x64xbf16, #tpu.memory_space<vmem>>, %arg2: memref<1x64xf32, #tpu.memory_space<vmem>>, %arg3: memref<1x64xf32, #tpu.memory_space<vmem>>, %arg4: memref<64x16xbf16, #tpu.memory_space<vmem>>, %arg5: memref<1x16xf32, #tpu.memory_space<vmem>>, %arg6: memref<32x16xf32, #tpu.memory_space<vmem>>) attributes {dimension_semantics = [], scalar_prefetch = 0 : i64, scratch_operands = 0 : i64, tpu.core_type = #tpu.core_type<tc>} {
    %c0 = arith.constant 0 : index
    %c0_0 = arith.constant 0 : index
    %0 = vector.load %arg0[%c0, %c0_0] : memref<32x32xf32, #tpu.memory_space<vmem>>, vector<32x32xf32>
    %1 = arith.truncf %0 : vector<32x32xf32> to vector<32x32xbf16>
    %c0_1 = arith.constant 0 : index
    %c0_2 = arith.constant 0 : index
    %2 = vector.load %arg1[%c0_1, %c0_2] : memref<32x64xbf16, #tpu.memory_space<vmem>>, vector<32x64xbf16>
    %cst = arith.constant dense<0.000000e+00> : vector<32x64xf32>
    %3 = tpu.matmul %1, %2, %cst {dimension_numbers = #tpu.dot_dimension_numbers<[1], [0], [0], [1], [0, 0, 1, 1], [], []>} : vector<32x32xbf16>, vector<32x64xbf16>, vector<32x64xf32> -> vector<32x64xf32>
    %4 = tpu.iota {dimensions = array<i32: 0>} : vector<4x32xi32>
    %5 = tpu.iota {dimensions = array<i32: 1>} : vector<4x32xi32>
    %c4_i32 = arith.constant 4 : i32
    %c0_i32 = arith.constant 0 : i32
    %6 = arith.cmpi eq, %c4_i32, %c0_i32 : i32
    %c1_i32 = arith.constant 1 : i32
    %7 = arith.select %6, %c1_i32, %c4_i32 : i32
    %8 = vector.broadcast %7 : i32 to vector<4x32xi32>
    %9 = arith.remsi %5, %8 : vector<4x32xi32>
    %c0_i32_3 = arith.constant 0 : i32
    %10 = vector.broadcast %c0_i32_3 : i32 to vector<4x32xi32>
    %11 = arith.cmpi ne, %9, %10 : vector<4x32xi32>
    %c0_i32_4 = arith.constant 0 : i32
    %12 = vector.broadcast %c0_i32_4 : i32 to vector<4x32xi32>
    %13 = arith.cmpi slt, %9, %12 : vector<4x32xi32>
    %c0_i32_5 = arith.constant 0 : i32
    %14 = arith.cmpi slt, %7, %c0_i32_5 : i32
    %15 = vector.broadcast %14 : i1 to vector<4x32xi1>
    %16 = vector.broadcast %15 : vector<4x32xi1> to vector<4x32xi1>
    %17 = arith.xori %13, %16 : vector<4x32xi1>
    %18 = arith.andi %17, %11 : vector<4x32xi1>
    %19 = vector.broadcast %7 : i32 to vector<4x32xi32>
    %20 = arith.addi %9, %19 : vector<4x32xi32>
    %21 = arith.select %18, %20, %9 : vector<4x32xi1>, vector<4x32xi32>
    %22 = arith.cmpi eq, %21, %4 : vector<4x32xi32>
    %cst_6 = arith.constant 1.250000e-01 : f32
    %cst_7 = arith.constant 0.000000e+00 : f32
    %23 = vector.broadcast %cst_6 : f32 to vector<4x32xf32>
    %24 = vector.broadcast %cst_7 : f32 to vector<4x32xf32>
    %25 = arith.select %22, %23, %24 : vector<4x32xi1>, vector<4x32xf32>
    %26 = tpu.iota {dimensions = array<i32: 0>} : vector<32x4xi32>
    %27 = tpu.iota {dimensions = array<i32: 1>} : vector<32x4xi32>
    %c4_i32_8 = arith.constant 4 : i32
    %c0_i32_9 = arith.constant 0 : i32
    %28 = arith.cmpi eq, %c4_i32_8, %c0_i32_9 : i32
    %c1_i32_10 = arith.constant 1 : i32
    %29 = arith.select %28, %c1_i32_10, %c4_i32_8 : i32
    %30 = vector.broadcast %29 : i32 to vector<32x4xi32>
    %31 = arith.remsi %26, %30 : vector<32x4xi32>
    %c0_i32_11 = arith.constant 0 : i32
    %32 = vector.broadcast %c0_i32_11 : i32 to vector<32x4xi32>
    %33 = arith.cmpi ne, %31, %32 : vector<32x4xi32>
    %c0_i32_12 = arith.constant 0 : i32
    %34 = vector.broadcast %c0_i32_12 : i32 to vector<32x4xi32>
    %35 = arith.cmpi slt, %31, %34 : vector<32x4xi32>
    %c0_i32_13 = arith.constant 0 : i32
    %36 = arith.cmpi slt, %29, %c0_i32_13 : i32
    %37 = vector.broadcast %36 : i1 to vector<32x4xi1>
    %38 = vector.broadcast %37 : vector<32x4xi1> to vector<32x4xi1>
    %39 = arith.xori %35, %38 : vector<32x4xi1>
    %40 = arith.andi %39, %33 : vector<32x4xi1>
    %41 = vector.broadcast %29 : i32 to vector<32x4xi32>
    %42 = arith.addi %31, %41 : vector<32x4xi32>
    %43 = arith.select %40, %42, %31 : vector<32x4xi1>, vector<32x4xi32>
    %44 = arith.cmpi eq, %43, %27 : vector<32x4xi32>
    %cst_14 = arith.constant 1.000000e+00 : f32
    %cst_15 = arith.constant 0.000000e+00 : f32
    %45 = vector.broadcast %cst_14 : f32 to vector<32x4xf32>
    %46 = vector.broadcast %cst_15 : f32 to vector<32x4xf32>
    %47 = arith.select %44, %45, %46 : vector<32x4xi1>, vector<32x4xf32>
    %48 = arith.mulf %3, %3 : vector<32x64xf32>
    %49 = tpu.concatenate %3, %48 in 1 : vector<32x64xf32>, vector<32x64xf32> -> vector<32x128xf32>
    %cst_16 = arith.constant dense<0.000000e+00> : vector<4x128xf32>
    %50 = tpu.matmul %25, %49, %cst_16 {dimension_numbers = #tpu.dot_dimension_numbers<[1], [0], [0], [1], [0, 0, 1, 1], [], []>} : vector<4x32xf32>, vector<32x128xf32>, vector<4x128xf32> -> vector<4x128xf32>
    %cst_17 = arith.constant dense<0.000000e+00> : vector<32x128xf32>
    %51 = tpu.matmul %47, %50, %cst_17 {dimension_numbers = #tpu.dot_dimension_numbers<[1], [0], [0], [1], [0, 0, 1, 1], [], []>} : vector<32x4xf32>, vector<4x128xf32>, vector<32x128xf32> -> vector<32x128xf32>
    %52 = vector.extract_strided_slice %51 {offsets = [0, 0], sizes = [32, 64], strides = [1, 1]} : vector<32x128xf32> to vector<32x64xf32>
    %53 = vector.extract_strided_slice %51 {offsets = [0, 64], sizes = [32, 64], strides = [1, 1]} : vector<32x128xf32> to vector<32x64xf32>
    %54 = arith.mulf %52, %52 : vector<32x64xf32>
    %55 = arith.subf %53, %54 : vector<32x64xf32>
    %cst_18 = arith.constant 0.000000e+00 : f32
    %56 = vector.broadcast %cst_18 : f32 to vector<32x64xf32>
    %57 = arith.maximumf %55, %56 : vector<32x64xf32>
    %58 = arith.subf %3, %52 : vector<32x64xf32>
    %cst_19 = arith.constant 9.99999974E-6 : f32
    %59 = vector.broadcast %cst_19 : f32 to vector<32x64xf32>
    %60 = arith.addf %57, %59 : vector<32x64xf32>
    %61 = math.rsqrt %60 : vector<32x64xf32>
    %62 = arith.mulf %58, %61 : vector<32x64xf32>
    %c0_20 = arith.constant 0 : index
    %c0_21 = arith.constant 0 : index
    %63 = vector.load %arg2[%c0_20, %c0_21] : memref<1x64xf32, #tpu.memory_space<vmem>>, vector<1x64xf32>
    %64 = vector.broadcast %63 : vector<1x64xf32> to vector<32x64xf32>
    %65 = arith.mulf %62, %64 : vector<32x64xf32>
    %c0_22 = arith.constant 0 : index
    %c0_23 = arith.constant 0 : index
    %66 = vector.load %arg3[%c0_22, %c0_23] : memref<1x64xf32, #tpu.memory_space<vmem>>, vector<1x64xf32>
    %67 = vector.broadcast %66 : vector<1x64xf32> to vector<32x64xf32>
    %68 = arith.addf %65, %67 : vector<32x64xf32>
    %cst_24 = arith.constant 0.000000e+00 : f32
    %69 = vector.broadcast %cst_24 : f32 to vector<32x64xf32>
    %70 = arith.maximumf %68, %69 : vector<32x64xf32>
    %71 = arith.truncf %70 : vector<32x64xf32> to vector<32x64xbf16>
    %c0_25 = arith.constant 0 : index
    %c0_26 = arith.constant 0 : index
    %72 = vector.load %arg4[%c0_25, %c0_26] : memref<64x16xbf16, #tpu.memory_space<vmem>>, vector<64x16xbf16>
    %cst_27 = arith.constant dense<0.000000e+00> : vector<32x16xf32>
    %73 = tpu.matmul %71, %72, %cst_27 {dimension_numbers = #tpu.dot_dimension_numbers<[1], [0], [0], [1], [0, 0, 1, 1], [], []>} : vector<32x64xbf16>, vector<64x16xbf16>, vector<32x16xf32> -> vector<32x16xf32>
    %c0_28 = arith.constant 0 : index
    %c0_29 = arith.constant 0 : index
    %74 = vector.load %arg5[%c0_28, %c0_29] : memref<1x16xf32, #tpu.memory_space<vmem>>, vector<1x16xf32>
    %75 = vector.broadcast %74 : vector<1x16xf32> to vector<32x16xf32>
    %76 = arith.addf %73, %75 : vector<32x16xf32>
    %c0_30 = arith.constant 0 : index
    %c0_31 = arith.constant 0 : index
    %77 = vector.load %arg6[%c0_30, %c0_31] : memref<32x16xf32, #tpu.memory_space<vmem>>, vector<32x16xf32>
    tpu.vector_store %arg6[%c0_30, %c0_31], %76 {strides = array<i32>} : memref<32x16xf32, #tpu.memory_space<vmem>>, vector<32x16xf32>,
    return
  }
}

</mosaic_0001>

<bundles_post_ra>
// kernel: mlp_forward.1
= control target key start
LH: loop header
LB: loop body
LE: loop exit
PB: predicated region body
PF: predicated region fallthrough
CT: control target
= control target key end

     0   :  { %11 = vsyncpa [#allocation3], 0  ;;  %s925_s0 = inlined_call_operand.vmem [shape: f32[32,32], index: 0, kind: input, shape index: {}]   ;;  %s926_s1 = inlined_call_operand.vmem [shape: bf16[32,64], index: 1, kind: input, shape index: {}]   ;;  %s927_s2 = inlined_call_operand.vmem [shape: f32[1,64], index: 2, kind: input, shape index: {}]   ;;  %s928_s3 = inlined_call_operand.hbm [shape: f32[1,64], index: 3, kind: input, shape index: {}]   ;;  %s929_s4 = inlined_call_operand.vmem [shape: bf16[64,16], index: 4, kind: input, shape index: {}]   ;;  %s930_s5 = inlined_call_operand.hbm [shape: f32[1,16], index: 5, kind: input, shape index: {}]   ;;  %s931_s6 = inlined_call_operand.hbm [shape: f32[32,16], index: 6, kind: output, shape index: {}]  }
   0x1   :  { %12 = vsyncpa [#allocation6], 0 }
   0x2   :  { %13 = vsyncpa [#allocation4], 0  ;;  %s775_s21 = smov [#allocation2]   ;;  %s776_s23 = smov [#allocation5]  }
   0x3   :  { %s26_s22 = sshll.u32 %s775_s21, 4  ;;  %s38_s24 = sshll.u32 %s776_s23, 4  ;;  %s27_s22 = int_to_ptr.vmem [resolvable:$true] %s26_s22  ;;  %s39_s24 = int_to_ptr.vmem [resolvable:$true] %s38_s24 }
   0x4   :  { %s717_s25 = scalar_lea.vmem %s27_s22, 16  ;;  %s721_s26 = scalar_lea.vmem %s27_s22, 32 }
   0x5   :  { %p718_p0 = scmp.ne.s32.totalorder %s27_s22, %s717_s25  ;;  %p722_p1 = scmp.lt.s32.totalorder %s27_s22, %s27_s22 }
   0x6   :  { %p723_p2 = scmp.lt.s32.totalorder %s721_s26, %s717_s25 }
   0x8   :  { %p724_p3 = por %p723_p2, %p722_p1 }
   0xa   :  { %p725_p4 = pnand %p724_p3, %p718_p0 }
   0xc   :  { %728 = shalt.err (!%p725_p4)
}
   0xd   :  { %29 = dma.hbm_to_vmem [thread:$0]  %s928_s3, 16, %s27_s22, [#allocation3]  }
   0xe   :  { %s737_s29 = scalar_lea.vmem %s39_s24, 16  ;;  %s741_s30 = scalar_lea.vmem %s39_s24, 32 }
   0xf   :  { %p738_p5 = scmp.ne.s32.totalorder %s39_s24, %s737_s29  ;;  %p742_p6 = scmp.lt.s32.totalorder %s39_s24, %s39_s24 }
  0x10   :  { %p743_p7 = scmp.lt.s32.totalorder %s741_s30, %s737_s29 }
  0x12   :  { %p744_p8 = por %p743_p7, %p742_p6 }
  0x14   :  { %p745_p9 = pnand %p744_p8, %p738_p5 }
  0x16   :  { %748 = shalt.err (!%p745_p9)
}
  0x17   :  { %41 = dma.hbm_to_vmem [thread:$0]  %s930_s5, 16, %s39_s24, [#allocation6]  }
  0x18   :  { %769 = dma.done.wait [#allocation3], 16  }
  0x19   :  { %770 = vsyncadd [#allocation3], 4294967280 }
  0x1a   :  { %771 = dma.done.wait [#allocation6], 16  }
  0x1b   :  { %772 = vsyncadd [#allocation6], 4294967280  ;;  %v695_v0 = vld [vmem:[%s926_s1 + $0x8] sm:$0xff]   ;;  %v696_v1 = vld [vmem:[%s926_s1] sm:$0xff]   ;;  %vm71_vm0 = vcmask 261120   ;;  %v777_v8 = vmov 0.0   ;;  %v127_v17 = vlaneseq }
  0x1c   :  { %648 = vmatprep.subr.bf16.mxu1 %v695_v0  ;;  %v49_v2 = vld [vmem:[%s925_s0] sm:$0xff]  ;;  %v50_v3 = vld [vmem:[%s925_s0 + $0x8] sm:$0xff]  ;;  %v51_v4 = vld [vmem:[%s925_s0 + $0x10] sm:$0xff]  ;;  %vm778_vm1 = vmmov 0   ;;  %vm224_vm2 = vcmask 523264   ;;  %vm302_vm5 = vcmask 31744  }
  0x1d   :  { %649 = vmatpush3.bf16.msra.mxu1 %v695_v0  ;;  %v53_v5 = vpack.c.bf16 %v50_v3, %v49_v2  ;;  %v52_v6 = vld [vmem:[%s925_s0 + $0x18] sm:$0xff]  ;;  %s779_s0 = smov 64   ;;  %v130_v18 = vand.u32 127, %v127_v17  ;;  %v128_v21 = vshrl.u32 %v127_v17, 7  ;;  %vm315_vm7 = vcmask 1043456   ;;  %v698_v3 = vld [vmem:[%s929_s4 + $0x10] sm:$0xff]  }
  0x1e   :  { %650 = vmatprep.subr.bf16.mxu1 %v696_v1  ;;  %v54_v7 = vpack.c.bf16 %v52_v6, %v51_v4  ;;  %v697_v61 = vld [vmem:[%s929_s4 + $0x18] sm:$0xff]   ;;  %v700_v6 = vld [vmem:[%s929_s4] sm:$0xff]   ;;  %vm586_vm10 = vcmask 130048  }
  0x1f   :  { %652 = vmatprep.mubr.msk.bf16.mxu1 %vm71_vm0, %v53_v5  ;;  %v135_v22 = vand.u32 3, %v130_v18  ;;  %v152_v30 = vand.u32 3, %v128_v21  ;;  %v145_v32 = vadd.s32 8, %v128_v21  ;;  %v146_v33 = vadd.s32 16, %v128_v21  ;;  %v699_v5 = vld [vmem:[%s929_s4 + $0x8] sm:$0xff]  }
  0x20   :  { %v147_v35 = vadd.s32 24, %v128_v21 }
  0x21   :  { %651 = vmatpush3.bf16.msra.mxu1 %v696_v1  ;;  %vm143_vm3 = vcmp.eq.s32.totalorder %v135_v22, %v128_v21  ;;  %vm196_vm4 = vcmp.eq.s32.totalorder %v152_v30, %v130_v18  ;;  %v159_v34 = vand.u32 3, %v145_v32  ;;  %v166_v36 = vand.u32 3, %v146_v33 }
  0x22   :  { %656 = vmatprep.subr.mxu1 %v777_v8  ;;  %v144_v28 = vsel %vm143_vm3, 0.125, %v777_v8  ;;  %v200_v31 = vsel %vm196_vm4, 1.0, %v777_v8  ;;  %v173_v37 = vand.u32 3, %v147_v35 }
  0x23   :  { %669 = vmatprep.mubr.msk.f32.mxu0 %vm302_vm5, %v200_v31  ;;  %vm197_vm6 = vcmp.eq.s32.totalorder %v159_v34, %v130_v18  ;;  %vm198_vm8 = vcmp.eq.s32.totalorder %v166_v36, %v130_v18 }
  0x24   :  { %653 = vmatmul.mubr.msk.bf16.vlgmr.msra.gmra.mxu1 %vm71_vm0, %v54_v7  ;;  %v201_v39 = vsel %vm197_vm6, 1.0, %v777_v8  ;;  %v202_v40 = vsel %vm198_vm8, 1.0, %v777_v8  ;;  %vm199_vm9 = vcmp.eq.s32.totalorder %v173_v37, %v130_v18 }
  0x25   :  { %664 = vmatprep.mubr.msk.f32.mxu1 %vm778_vm1, %v777_v8  ;;  %v203_v42 = vsel %vm199_vm9, 1.0, %v777_v8 }
  0xe4   :  { %v845_v9 = vpop.f32.mrf.mxu1 }
  0xe5   :  { %v206_v15 = vmul.f32 %v845_v9, %v845_v9 }
  0xe6   :  { %v847_v10 = vpop.f32.mrf.mxu1 }
  0xe7   :  { %v204_v16 = vmul.f32 %v847_v10, %v847_v10 }
  0xe8   :  { %v850_v11 = vpop.f32.mrf.mxu1 }
  0xe9   :  { %v207_v12 = vmul.f32 %v850_v11, %v850_v11 }
  0xea   :  { %v854_v13 = vpop.f32.mrf.mxu1 }
  0xeb   :  { %218 = vrot.lane.b32.xlu0 %v207_v12, %s779_s0  ;;  %v205_v14 = vmul.f32 %v854_v13, %v854_v13 }
  0xed   :  { %214 = vrot.lane.b32.xlu1 %v205_v14, %s779_s0 }
  0xef   :  { %216 = vrot.lane.b32.xlu0 %v206_v15, %s779_s0 }
  0xf1   :  { %212 = vrot.lane.b32.xlu1 %v204_v16, %s779_s0  ;;  %v619_v16 = vld [vmem:[%s927_s2] ss:$0 sm:$0xff]  ;;  %s780_s2 = smov [#allocation7]  }
  0xf2   :  { %s596_s4 = sshll.u32 %s780_s2, 4  ;;  %s597_s4 = int_to_ptr.vmem [resolvable:$true] %s596_s4 }
  0xf3   :  { %s749_s28 = scalar_lea.vmem %s597_s4, 512  ;;  %p754_p11 = scmp.lt.s32.totalorder %s597_s4, %s597_s4 }
  0xf4   :  { %p750_p10 = scmp.ne.s32.totalorder %s597_s4, %s749_s28  ;;  %p755_p12 = scmp.lt.s32.totalorder %s749_s28, %s749_s28 }
  0xf6   :  { %p756_p13 = por %p755_p12, %p754_p11 }
  0xf8   :  { %p757_p0 = pnand %p756_p13, %p750_p10 }
 0x15d   :  { %v219_v19 = vpop.permute.xlu0 %218 }
 0x15e   :  { %v228_v20 = vsel %vm224_vm2, %v850_v11, %v219_v19 }
 0x15f   :  { %657 = vmatpush3.msra.mxu1 %v228_v20  ;;  %v215_v23 = vpop.permute.xlu1 %214  ;;  %v620_v20 = vld [vmem:[#allocation2] ss:$0 sm:$0xff] }
 0x160   :  { %658 = vmatprep.subr.mxu1 %v777_v8  ;;  %v226_v27 = vsel %vm224_vm2, %v854_v13, %v215_v23 }
 0x161   :  { %v217_v24 = vpop.permute.xlu0 %216 }
 0x162   :  { %v227_v25 = vsel %vm224_vm2, %v845_v9, %v217_v24 }
 0x163   :  { %659 = vmatpush3.msra.mxu1 %v227_v25  ;;  %v213_v26 = vpop.permute.xlu1 %212 }
 0x164   :  { %660 = vmatprep.subr.mxu1 %v777_v8  ;;  %v225_v29 = vsel %vm224_vm2, %v847_v10, %v213_v26 }
 0x165   :  { %661 = vmatpush3.msra.mxu1 %v226_v27 }
 0x166   :  { %662 = vmatprep.subr.mxu1 %v777_v8 }
 0x167   :  { %663 = vmatpush3.msra.mxu1 %v225_v29 }
 0x168   :  { %665 = vmatmul.mubr.msk.f32.vlgmr.msra.gmra.mxu1 %vm71_vm0, %v144_v28 }
 0x228   :  { %v298_v38 = vpop.f32.mrf.mxu1 }
 0x229   :  { %667 = vmatprep.subr.msk.mxu0 %vm315_vm7, %v298_v38 }
 0x22a   :  { %v666_v41 = vpop.f32.mrf.mxu1  ;;  %668 = vmatpush3.msk.msra.mxu0 %vm315_vm7, %v298_v38 }
 0x22b   :  { %670 = vmatmul.mubr.msk.f32.vlgmr.msra.gmra.mxu0 %vm302_vm5, %v201_v39  ;;  %675 = vmatprep.subr.bf16.mxu0 %v697_v61 }
 0x22c   :  { %672 = vmatprep.mubr.msk.f32.mxu0 %vm302_vm5, %v202_v40  ;;  %676 = vmatpush3.bf16.msra.mxu0 %v697_v61  ;;  %v621_v40 = vld [vmem:[#allocation5] ss:$0 sm:$0xff] }
 0x22d   :  { %677 = vmatprep.subr.bf16.mxu0 %v698_v3 }
 0x22f   :  { %673 = vmatmul.mubr.msk.f32.gmra.mxu0 %vm302_vm5, %v203_v42 }
 0x230   :  { %678 = vmatpush3.bf16.msra.mxu0 %v698_v3 }
 0x231   :  { %679 = vmatprep.subr.bf16.mxu0 %v699_v5 }
 0x234   :  { %680 = vmatpush3.bf16.msra.mxu0 %v699_v5 }
 0x235   :  { %681 = vmatprep.subr.bf16.mxu0 %v700_v6 }
 0x238   :  { %682 = vmatpush3.bf16.msra.mxu0 %v700_v6 }
 0x2eb   :  { %v671_v43 = vpop.f32.mrf.mxu0 }
 0x2ec   :  { %v405_v44 = vmul.f32 %v671_v43, %v671_v43  ;;  %v433_v15 = vsub.f32 %v854_v13, %v671_v43 }
 0x2ed   :  { %v385_v45 = vpop.f32.mrf.mxu0 }
 0x2ee   :  { %v404_v46 = vmul.f32 %v385_v45, %v385_v45  ;;  %414 = vrot.lane.b32.xlu1 %v405_v44, %s779_s0  ;;  %v432_v19 = vsub.f32 %v847_v10, %v385_v45 }
 0x2ef   :  { %v674_v47 = vpop.f32.mrf.mxu0 }
 0x2f0   :  { %v407_v48 = vmul.f32 %v674_v47, %v674_v47  ;;  %412 = vrot.lane.b32.xlu0 %v404_v46, %s779_s0  ;;  %v435_v24 = vsub.f32 %v850_v11, %v674_v47 }
 0x2f1   :  { %v889_v49 = vpop.f32.mrf.mxu0 }
 0x2f2   :  { %v406_v50 = vmul.f32 %v889_v49, %v889_v49  ;;  %418 = vrot.lane.b32.xlu1 %v407_v48, %s779_s0  ;;  %v434_v13 = vsub.f32 %v845_v9, %v889_v49 }
 0x2f4   :  { %416 = vrot.lane.b32.xlu0 %v406_v50, %s779_s0 }
 0x360   :  { %v415_v51 = vpop.permute.xlu1 %414 }
 0x361   :  { %v425_v52 = vsub.f32 %v671_v43, %v415_v51 }
 0x362   :  { %v413_v53 = vpop.permute.xlu0 %412 }
 0x363   :  { %v429_v54 = vmax.f32 %v425_v52, 0.0  ;;  %v424_v55 = vsub.f32 %v385_v45, %v413_v53 }
 0x364   :  { %v419_v56 = vpop.permute.xlu1 %418 }
 0x365   :  { %v437_v57 = vadd.f32 1e-05, %v429_v54  ;;  %v428_v58 = vmax.f32 %v424_v55, 0.0  ;;  %v427_v59 = vsub.f32 %v674_v47, %v419_v56 }
 0x366   :  { %v417_v60 = vpop.permute.xlu0 %416 }
 0x367   :  { %701 = vrsqrt.f32 %v437_v57  ;;  %v436_v62 = vadd.f32 1e-05, %v428_v58  ;;  %v431_v63 = vmax.f32 %v427_v59, 0.0  ;;  %v426_v0 = vsub.f32 %v889_v49, %v417_v60 }
 0x369   :  { %703 = vrsqrt.f32 %v436_v62  ;;  %v439_v1 = vadd.f32 1e-05, %v431_v63  ;;  %v430_v2 = vmax.f32 %v426_v0, 0.0 }
 0x36b   :  { %705 = vrsqrt.f32 %v439_v1  ;;  %v438_v4 = vadd.f32 1e-05, %v430_v2 }
 0x36d   :  { %707 = vrsqrt.f32 %v438_v4 }
 0x374   :  { %v702_v7 = vpop.eup %701 }
 0x375   :  { %450 = vrot.lane.b32.xlu1 %v702_v7, %s779_s0 }
 0x376   :  { %v704_v8 = vpop.eup %703 }
 0x377   :  { %448 = vrot.lane.b32.xlu0 %v704_v8, %s779_s0 }
 0x378   :  { %v706_v12 = vpop.eup %705 }
 0x379   :  { %454 = vrot.lane.b32.xlu1 %v706_v12, %s779_s0 }
 0x37a   :  { %v708_v14 = vpop.eup %707 }
 0x37b   :  { %452 = vrot.lane.b32.xlu0 %v708_v14, %s779_s0 }
 0x3e7   :  { %v451_v17 = vpop.permute.xlu1 %450 }
 0x3e8   :  { %v461_v18 = vmul.f32 %v451_v17, %v433_v15 }
 0x3e9   :  { %v449_v21 = vpop.permute.xlu0 %448 }
 0x3ea   :  { %v472_v22 = vmul.f32 %v619_v16, %v461_v18  ;;  %v460_v23 = vmul.f32 %v449_v21, %v432_v19 }
 0x3eb   :  { %v455_v25 = vpop.permute.xlu1 %454 }
 0x3ec   :  { %v483_v26 = vadd.f32 %v620_v20, %v472_v22  ;;  %v471_v27 = vmul.f32 %v619_v16, %v460_v23  ;;  %v463_v28 = vmul.f32 %v455_v25, %v435_v24 }
 0x3ed   :  { %v453_v29 = vpop.permute.xlu0 %452 }
 0x3ee   :  { %v482_v30 = vadd.f32 %v620_v20, %v471_v27  ;;  %v474_v31 = vmul.f32 %v619_v16, %v463_v28  ;;  %v462_v32 = vmul.f32 %v453_v29, %v434_v13  ;;  %v487_v33 = vmax.f32 %v483_v26, 0.0 }
 0x3f0   :  { %v486_v34 = vmax.f32 %v482_v30, 0.0  ;;  %v485_v10 = vadd.f32 %v620_v20, %v474_v31  ;;  %v473_v35 = vmul.f32 %v619_v16, %v462_v32 }
 0x3f2   :  { %v490_v36 = vpack.c.bf16 %v487_v33, %v486_v34  ;;  %v484_v37 = vadd.f32 %v620_v20, %v473_v35  ;;  %v489_v38 = vmax.f32 %v485_v10, 0.0 }
 0x3f4   :  { %v488_v39 = vmax.f32 %v484_v37, 0.0  ;;  %683 = vmatprep.mubr.msk.bf16.mxu0 %vm224_vm2, %v490_v36 }
 0x3f6   :  { %v491_v11 = vpack.c.bf16 %v489_v38, %v488_v39 }
 0x3f8   :  { %684 = vmatmul.mubr.msk.bf16.vlgmr.msra.gmra.mxu0 %vm224_vm2, %v491_v11 }
 0x4b8   :  { %v685_v41 = vpop.f32.mrf.mxu0 }
 0x4b9   :  { %v580_v9 = vadd.f32 %v685_v41, %v621_v40 }
 0x4ba   :  { %v571_v42 = vpop.f32.mrf.mxu0 }
 0x4bb   :  { %589 = vst.msk [vmem:[#allocation7 + $0x10] sm:$0xff] %vm586_vm10, %v580_v9  ;;  %v572_v43 = vadd.f32 %v621_v40, %v571_v42 }
 0x4bc   :  { %v686_v44 = vpop.f32.mrf.mxu0 }
 0x4bd   :  { %587 = vst.msk [vmem:[#allocation7] sm:$0xff] %vm586_vm10, %v572_v43  ;;  %v583_v45 = vadd.f32 %v686_v44, %v621_v40 }
 0x4be   :  { %v574_v46 = vpop.f32.mrf.mxu0 }
 0x4bf   :  { %590 = vst.msk [vmem:[#allocation7 + $0x18] sm:$0xff] %vm586_vm10, %v583_v45  ;;  %v575_v47 = vadd.f32 %v621_v40, %v574_v46 }
 0x4c1   :  { %588 = vst.msk [vmem:[#allocation7 + $0x8] sm:$0xff] %vm586_vm10, %v575_v47 }
 0x4c2   :  { %760 = shalt.err (!%p757_p0)
}
 0x4c3   :  { %s781_s29 = smov 128   ;;  %s782_s30 = smov 8  }
 0x4c4   :  { %602 = dma.vmem_to_hbm [thread:$0]  %s597_s4, 512, %s931_s6, [#allocation4], %s781_s29, %s781_s29, %s782_s30  }
 0x4c5   :  { %773 = dma.done.wait [#allocation4], 512  }
 0x4c6   :  { %774 = vsyncadd [#allocation4], 4294966784 }
 0x4c7   :  { %606 = vsyncpa [#allocation3], 1 }
 0x4c8   :  { %607 = vsyncpa [#allocation6], 1 }
 0x4c9   :  { %608 = vsyncpa [#allocation4], 1 }

</bundles_post_ra>
